<compile_context>
chip_gen: v5e
topology: v5e:2x2
jax: 0.10.0
libtpu: 0.0.40
codegen_flags: <defaults>
</compile_context>

<pallas_src>
import math
from functools import partial

import jax
import jax.numpy as jnp
from jax.experimental import pallas as pl
from jax.experimental.pallas import tpu as pltpu


_LANE = 128   # hidden feature dims are padded to a multiple of this (lane width)


def _round_up(x, m):
    return ((x + m - 1) // m) * m


def _leaky_relu(v, negative_slope=0.4):
    return jnp.where(v >= 0, v, negative_slope * v)


def _choose_block_m(rows):
    """Row-tile size.

    <=512 rows: one grid step (block == full row extent, always layout-legal).
    512..8192: ~half the batch, 256-aligned -> >=2 "parallel" grid steps so the
               two v7x TensorCores both get work.
    >8192:     4096-row tiles -- big enough to amortize per-step overhead,
               small enough for v7x's 64 MiB VMEM (narrow in/out keeps the
               working set well under the 32 MiB scoped default).
    """
    if rows <= 512:
        return rows
    if rows <= 8192:
        return max(256, _round_up(pl.cdiv(rows, 2), 256))
    return 4096


def _encoder_kernel(x_ref, w1_ref, w_rest_ref, b_ref, o_ref, *, n_layers):
    """Fused (Linear -> LeakyReLU(0.4)) x n_layers.

    x_ref:      (block_m, in_dim)            activations at true width
    w1_ref:     (in_dim, H)                  layer-1 weight, compute dtype
    w_rest_ref: (n_layers-1, H, H)           packed layer 2..n weights
    b_ref:      (n_layers, 1, H)             packed biases, f32
    o_ref:      (block_m, out_dim)           narrow f32 writeback
    Padded lanes stay exactly zero (zero weight cols/rows + zero bias +
    LeakyReLU(0) = 0), so real lanes are bit-exact.
    """
    compute_dtype = w1_ref.dtype
    out_dim = o_ref.shape[-1]

    # Layer 1: K = true input width (<128 is fine on the MXU; far cheaper than
    # streaming 4x the bytes of zero-padded input from HBM).
    h = jnp.dot(x_ref[...].astype(compute_dtype), w1_ref[...],
                preferred_element_type=jnp.float32)
    h = _leaky_relu(h + b_ref[0])

    for l in range(1, n_layers):                       # short, static -> unrolled
        h = jnp.dot(h.astype(compute_dtype), w_rest_ref[l - 1],
                    preferred_element_type=jnp.float32)
        h = _leaky_relu(h + b_ref[l])

    o_ref[...] = h[:, :out_dim].astype(o_ref.dtype)


def prepare_encoder_params(params, *, compute_dtype=jnp.bfloat16):
    """Pad / cast / pack the weights ONCE (hoisted out of the forward call).

    params: list of (W_t, b); W_t is (in, out) so layer(h) = h @ W_t + b,
    b has shape (out,) or (1, out).
    """
    n_layers = len(params)
    assert n_layers >= 2
    in_dim = params[0][0].shape[0]
    true_dims = [in_dim] + [int(w.shape[1]) for w, _ in params]
    out_dim = true_dims[-1]
    h_pad = _round_up(max(true_dims[1:]), _LANE)   # common padded hidden width

    # Layer-1 weight keeps its TRUE input width (no HBM lane padding of x).
    w1 = jnp.pad(params[0][0],
                 ((0, 0), (0, h_pad - true_dims[1]))).astype(compute_dtype)

    # Layers 2..n packed into one (n_layers-1, H, H) array.
    w_rest = []
    for (w_t, _), fin in zip(params[1:], true_dims[1:-1]):
        fout = w_t.shape[1]
        w_rest.append(jnp.pad(w_t, ((0, h_pad - fin), (0, h_pad - fout))))
    w_rest = jnp.stack(w_rest).astype(compute_dtype)

    # Biases packed into (n_layers, 1, H) f32.
    biases = []
    for (_, b), fout in zip(params, true_dims[1:]):
        b_row = jnp.reshape(b, (1, fout)).astype(jnp.float32)
        biases.append(jnp.pad(b_row, ((0, 0), (0, h_pad - fout))))
    b_pack = jnp.stack(biases)

    return dict(w1=w1, w_rest=w_rest, b=b_pack,
                true_dims=true_dims, n_layers=n_layers,
                in_dim=in_dim, out_dim=out_dim, h_pad=h_pad,
                compute_dtype=compute_dtype)


def encoder_forward(x, prepared, *, block_m=None):
    """x: (B, input_size) float32. Returns (B, hidden_sizes[-1]) float32."""
    B, in_dim = x.shape
    assert in_dim == prepared["in_dim"], (in_dim, prepared["in_dim"])
    out_dim = prepared["out_dim"]
    n_layers = prepared["n_layers"]
    w1, w_rest, b = prepared["w1"], prepared["w_rest"], prepared["b"]

    if block_m is None:
        block_m = _choose_block_m(B)
    grid_m = pl.cdiv(B, block_m)   # partial last block: OOB rows don't-care / dropped

    in_specs = [
        # x at its true feature width; last block dim == full array dim is legal (<128 ok)
        pl.BlockSpec((block_m, in_dim), lambda i: (i, 0)),
        # weights / biases: full arrays, constant block index -> resident across steps
        pl.BlockSpec(w1.shape, lambda i: (0, 0)),
        pl.BlockSpec(w_rest.shape, lambda i: (0, 0, 0)),
        pl.BlockSpec(b.shape, lambda i: (0, 0, 0)),
    ]
    # Narrow f32 writeback (16x fewer HBM bytes than a 128-lane padded output).
    out_specs = pl.BlockSpec((block_m, out_dim), lambda i: (i, 0))

    # Advisory cost estimate from TRUE (unpadded) dims.
    true_dims = prepared["true_dims"]
    w_itemsize = jnp.dtype(prepared["compute_dtype"]).itemsize
    flops = sum(2 * B * fi * fo for fi, fo in zip(true_dims[:-1], true_dims[1:]))
    bytes_accessed = (x.size * x.dtype.itemsize
                      + B * out_dim * x.dtype.itemsize
                      + sum(fi * fo * w_itemsize + fo * 4
                            for fi, fo in zip(true_dims[:-1], true_dims[1:])))
    cost = pl.CostEstimate(flops=flops, transcendentals=0,
                           bytes_accessed=bytes_accessed)

    return pl.pallas_call(
        partial(_encoder_kernel, n_layers=n_layers),
        out_shape=jax.ShapeDtypeStruct((B, out_dim), x.dtype),
        grid_spec=pltpu.PrefetchScalarGridSpec(
            num_scalar_prefetch=0,
            grid=(grid_m,),
            in_specs=in_specs,
            out_specs=out_specs,
        ),
        compiler_params=pltpu.CompilerParams(
            dimension_semantics=("parallel",)),
        cost_estimate=cost,
    )(x, w1, w_rest, b)


# ----------------------------------------------------------------------------
# Parameter construction mirroring the PyTorch module, and a pure-JAX reference
# ----------------------------------------------------------------------------

def xavier_uniform(key, fan_out, fan_in, dtype=jnp.float32):
    """Matches torch.nn.init.xavier_uniform_ for a (fan_out, fan_in) Linear weight."""
    limit = math.sqrt(6.0 / (fan_in + fan_out))
    return jax.random.uniform(key, (fan_out, fan_in), dtype, minval=-limit, maxval=limit)


def make_encoder_params(key, input_size, hidden_sizes):
    """Mirrors Encoder.__init__: xavier_uniform weights, zero biases."""
    dims = [input_size] + list(hidden_sizes)
    params = []
    keys = jax.random.split(key, len(hidden_sizes))
    for k, fan_in, fan_out in zip(keys, dims[:-1], dims[1:]):
        w = xavier_uniform(k, fan_out, fan_in)      # torch layout (out, in)
        w_t = jnp.transpose(w)                      # kernel layout (in, out)
        bias = jnp.zeros((1, fan_out), jnp.float32) # constant_(bias, 0.0)
        params.append((w_t, bias))
    return params


def encoder_reference(x, params):
    """Pure-JAX f32 reference for correctness checking."""
    h = x
    for w_t, bias in params:
        h = _leaky_relu(h @ w_t + bias, 0.4)
    return h


if __name__ == "__main__":
    key = jax.random.PRNGKey(0)
    k_x, k_p = jax.random.split(key)

    batch = 16
    input_size = 32
    hidden_sizes = [64, 48, 32, 16, 8]

    params = make_encoder_params(k_p, input_size, hidden_sizes)
    prep_f32 = prepare_encoder_params(params, compute_dtype=jnp.float32)
    prep_bf16 = prepare_encoder_params(params, compute_dtype=jnp.bfloat16)

    x = jax.random.normal(k_x, (batch, input_size), jnp.float32)
    ref = encoder_reference(x, params)

    # f32 matmul path: tight tolerance vs reference.
    out_f32 = jax.block_until_ready(encoder_forward(x, prep_f32))
    assert out_f32.shape == (batch, hidden_sizes[-1]), out_f32.shape
    assert jnp.allclose(out_f32, ref, atol=1e-5, rtol=1e-5), \
        f"f32 max abs err {jnp.max(jnp.abs(out_f32 - ref))}"

    # Default bf16-matmul / f32-accumulate path (fast MXU path on every chip).
    out_bf16 = jax.block_until_ready(encoder_forward(x, prep_bf16))
    assert out_bf16.shape == (batch, hidden_sizes[-1]), out_bf16.shape
    assert jnp.allclose(out_bf16, ref, atol=3e-2, rtol=3e-2), \
        f"bf16 max abs err {jnp.max(jnp.abs(out_bf16 - ref))}"

    # Ragged batch (not a multiple of 8): block == full row extent, single step.
    x2 = jax.random.normal(k_x, (50, input_size), jnp.float32)
    out2 = jax.block_until_ready(encoder_forward(x2, prep_f32))
    ref2 = encoder_reference(x2, params)
    assert out2.shape == (50, hidden_sizes[-1]), out2.shape
    assert jnp.allclose(out2, ref2, atol=1e-5, rtol=1e-5), \
        f"ragged max abs err {jnp.max(jnp.abs(out2 - ref2))}"

    # Mid-size batch: >=2 grid steps with a partial boundary block
    # (OOB rows are don't-care and dropped on writeback).
    x3 = jax.random.normal(k_x, (600, input_size), jnp.float32)
    out3 = jax.block_until_ready(encoder_forward(x3, prep_f32))
    ref3 = encoder_reference(x3, params)
    assert out3.shape == (600, hidden_sizes[-1]), out3.shape
    assert jnp.allclose(out3, ref3, atol=1e-5, rtol=1e-5), \
        f"mid-batch max abs err {jnp.max(jnp.abs(out3 - ref3))}"

    print("KERNEL_OK")
</pallas_src>

<mosaic_0001>
module attributes {stable_mosaic.version = 11 : i64} {
  func.func @_encoder_kernel(%arg0: i32, %arg1: memref<16x32xf32, #tpu.memory_space<vmem>>, %arg2: memref<32x128xf32, #tpu.memory_space<vmem>>, %arg3: memref<4x128x128xf32, #tpu.memory_space<vmem>>, %arg4: memref<5x1x128xf32, #tpu.memory_space<vmem>>, %arg5: memref<16x8xf32, #tpu.memory_space<vmem>>) attributes {dimension_semantics = [#tpu.dimension_semantics<parallel>], iteration_bounds = array<i64: 1>, scalar_prefetch = 0 : i64, scratch_operands = 0 : i64, tpu.core_type = #tpu.core_type<tc>, window_params = [{transform_indices = @transform_0, window_bounds = array<i64: 16, 32>}, {pipeline_mode = #tpu.pipeline_mode<synchronous>, transform_indices = @transform_1, window_bounds = array<i64: 32, 128>}, {pipeline_mode = #tpu.pipeline_mode<synchronous>, transform_indices = @transform_2, window_bounds = array<i64: 4, 128, 128>}, {pipeline_mode = #tpu.pipeline_mode<synchronous>, transform_indices = @transform_3, window_bounds = array<i64: 5, 1, 128>}, {transform_indices = @transform_4, window_bounds = array<i64: 16, 8>}]} {
    %c0 = arith.constant 0 : index
    %c0_0 = arith.constant 0 : index
    %0 = vector.load %arg1[%c0, %c0_0] : memref<16x32xf32, #tpu.memory_space<vmem>>, vector<16x32xf32>
    %c0_1 = arith.constant 0 : index
    %c0_2 = arith.constant 0 : index
    %1 = vector.load %arg2[%c0_1, %c0_2] : memref<32x128xf32, #tpu.memory_space<vmem>>, vector<32x128xf32>
    %cst = arith.constant dense<0.000000e+00> : vector<16x128xf32>
    %2 = tpu.matmul %0, %1, %cst {dimension_numbers = #tpu.dot_dimension_numbers<[1], [0], [0], [1], [0, 0, 1, 1], [], []>} : vector<16x32xf32>, vector<32x128xf32>, vector<16x128xf32> -> vector<16x128xf32>
    %c0_3 = arith.constant 0 : index
    %c0_4 = arith.constant 0 : index
    %c0_5 = arith.constant 0 : index
    %3 = vector.load %arg4[%c0_3, %c0_4, %c0_5] : memref<5x1x128xf32, #tpu.memory_space<vmem>>, vector<1x1x128xf32>
    %4 = vector.shape_cast %3 : vector<1x1x128xf32> to vector<1x128xf32>
    %5 = vector.broadcast %4 : vector<1x128xf32> to vector<16x128xf32>
    %6 = arith.addf %2, %5 : vector<16x128xf32>
    %cst_6 = arith.constant 0.000000e+00 : f32
    %7 = vector.broadcast %cst_6 : f32 to vector<16x128xf32>
    %8 = arith.cmpf oge, %6, %7 : vector<16x128xf32>
    %cst_7 = arith.constant 4.000000e-01 : f32
    %9 = vector.broadcast %cst_7 : f32 to vector<16x128xf32>
    %10 = arith.mulf %9, %6 : vector<16x128xf32>
    %11 = arith.select %8, %6, %10 : vector<16x128xi1>, vector<16x128xf32>
    %c0_8 = arith.constant 0 : index
    %c0_9 = arith.constant 0 : index
    %c0_10 = arith.constant 0 : index
    %12 = vector.load %arg3[%c0_8, %c0_9, %c0_10] : memref<4x128x128xf32, #tpu.memory_space<vmem>>, vector<1x128x128xf32>
    %13 = vector.shape_cast %12 : vector<1x128x128xf32> to vector<128x128xf32>
    %cst_11 = arith.constant dense<0.000000e+00> : vector<16x128xf32>
    %14 = tpu.matmul %11, %13, %cst_11 {dimension_numbers = #tpu.dot_dimension_numbers<[1], [0], [0], [1], [0, 0, 1, 1], [], []>} : vector<16x128xf32>, vector<128x128xf32>, vector<16x128xf32> -> vector<16x128xf32>
    %c1 = arith.constant 1 : index
    %c0_12 = arith.constant 0 : index
    %c0_13 = arith.constant 0 : index
    %15 = vector.load %arg4[%c1, %c0_12, %c0_13] : memref<5x1x128xf32, #tpu.memory_space<vmem>>, vector<1x1x128xf32>
    %16 = vector.shape_cast %15 : vector<1x1x128xf32> to vector<1x128xf32>
    %17 = vector.broadcast %16 : vector<1x128xf32> to vector<16x128xf32>
    %18 = arith.addf %14, %17 : vector<16x128xf32>
    %cst_14 = arith.constant 0.000000e+00 : f32
    %19 = vector.broadcast %cst_14 : f32 to vector<16x128xf32>
    %20 = arith.cmpf oge, %18, %19 : vector<16x128xf32>
    %cst_15 = arith.constant 4.000000e-01 : f32
    %21 = vector.broadcast %cst_15 : f32 to vector<16x128xf32>
    %22 = arith.mulf %21, %18 : vector<16x128xf32>
    %23 = arith.select %20, %18, %22 : vector<16x128xi1>, vector<16x128xf32>
    %c1_16 = arith.constant 1 : index
    %c0_17 = arith.constant 0 : index
    %c0_18 = arith.constant 0 : index
    %24 = vector.load %arg3[%c1_16, %c0_17, %c0_18] : memref<4x128x128xf32, #tpu.memory_space<vmem>>, vector<1x128x128xf32>
    %25 = vector.shape_cast %24 : vector<1x128x128xf32> to vector<128x128xf32>
    %cst_19 = arith.constant dense<0.000000e+00> : vector<16x128xf32>
    %26 = tpu.matmul %23, %25, %cst_19 {dimension_numbers = #tpu.dot_dimension_numbers<[1], [0], [0], [1], [0, 0, 1, 1], [], []>} : vector<16x128xf32>, vector<128x128xf32>, vector<16x128xf32> -> vector<16x128xf32>
    %c2 = arith.constant 2 : index
    %c0_20 = arith.constant 0 : index
    %c0_21 = arith.constant 0 : index
    %27 = vector.load %arg4[%c2, %c0_20, %c0_21] : memref<5x1x128xf32, #tpu.memory_space<vmem>>, vector<1x1x128xf32>
    %28 = vector.shape_cast %27 : vector<1x1x128xf32> to vector<1x128xf32>
    %29 = vector.broadcast %28 : vector<1x128xf32> to vector<16x128xf32>
    %30 = arith.addf %26, %29 : vector<16x128xf32>
    %cst_22 = arith.constant 0.000000e+00 : f32
    %31 = vector.broadcast %cst_22 : f32 to vector<16x128xf32>
    %32 = arith.cmpf oge, %30, %31 : vector<16x128xf32>
    %cst_23 = arith.constant 4.000000e-01 : f32
    %33 = vector.broadcast %cst_23 : f32 to vector<16x128xf32>
    %34 = arith.mulf %33, %30 : vector<16x128xf32>
    %35 = arith.select %32, %30, %34 : vector<16x128xi1>, vector<16x128xf32>
    %c2_24 = arith.constant 2 : index
    %c0_25 = arith.constant 0 : index
    %c0_26 = arith.constant 0 : index
    %36 = vector.load %arg3[%c2_24, %c0_25, %c0_26] : memref<4x128x128xf32, #tpu.memory_space<vmem>>, vector<1x128x128xf32>
    %37 = vector.shape_cast %36 : vector<1x128x128xf32> to vector<128x128xf32>
    %cst_27 = arith.constant dense<0.000000e+00> : vector<16x128xf32>
    %38 = tpu.matmul %35, %37, %cst_27 {dimension_numbers = #tpu.dot_dimension_numbers<[1], [0], [0], [1], [0, 0, 1, 1], [], []>} : vector<16x128xf32>, vector<128x128xf32>, vector<16x128xf32> -> vector<16x128xf32>
    %c3 = arith.constant 3 : index
    %c0_28 = arith.constant 0 : index
    %c0_29 = arith.constant 0 : index
    %39 = vector.load %arg4[%c3, %c0_28, %c0_29] : memref<5x1x128xf32, #tpu.memory_space<vmem>>, vector<1x1x128xf32>
    %40 = vector.shape_cast %39 : vector<1x1x128xf32> to vector<1x128xf32>
    %41 = vector.broadcast %40 : vector<1x128xf32> to vector<16x128xf32>
    %42 = arith.addf %38, %41 : vector<16x128xf32>
    %cst_30 = arith.constant 0.000000e+00 : f32
    %43 = vector.broadcast %cst_30 : f32 to vector<16x128xf32>
    %44 = arith.cmpf oge, %42, %43 : vector<16x128xf32>
    %cst_31 = arith.constant 4.000000e-01 : f32
    %45 = vector.broadcast %cst_31 : f32 to vector<16x128xf32>
    %46 = arith.mulf %45, %42 : vector<16x128xf32>
    %47 = arith.select %44, %42, %46 : vector<16x128xi1>, vector<16x128xf32>
    %c3_32 = arith.constant 3 : index
    %c0_33 = arith.constant 0 : index
    %c0_34 = arith.constant 0 : index
    %48 = vector.load %arg3[%c3_32, %c0_33, %c0_34] : memref<4x128x128xf32, #tpu.memory_space<vmem>>, vector<1x128x128xf32>
    %49 = vector.shape_cast %48 : vector<1x128x128xf32> to vector<128x128xf32>
    %cst_35 = arith.constant dense<0.000000e+00> : vector<16x128xf32>
    %50 = tpu.matmul %47, %49, %cst_35 {dimension_numbers = #tpu.dot_dimension_numbers<[1], [0], [0], [1], [0, 0, 1, 1], [], []>} : vector<16x128xf32>, vector<128x128xf32>, vector<16x128xf32> -> vector<16x128xf32>
    %c4 = arith.constant 4 : index
    %c0_36 = arith.constant 0 : index
    %c0_37 = arith.constant 0 : index
    %51 = vector.load %arg4[%c4, %c0_36, %c0_37] : memref<5x1x128xf32, #tpu.memory_space<vmem>>, vector<1x1x128xf32>
    %52 = vector.shape_cast %51 : vector<1x1x128xf32> to vector<1x128xf32>
    %53 = vector.broadcast %52 : vector<1x128xf32> to vector<16x128xf32>
    %54 = arith.addf %50, %53 : vector<16x128xf32>
    %cst_38 = arith.constant 0.000000e+00 : f32
    %55 = vector.broadcast %cst_38 : f32 to vector<16x128xf32>
    %56 = arith.cmpf oge, %54, %55 : vector<16x128xf32>
    %cst_39 = arith.constant 4.000000e-01 : f32
    %57 = vector.broadcast %cst_39 : f32 to vector<16x128xf32>
    %58 = arith.mulf %57, %54 : vector<16x128xf32>
    %59 = arith.select %56, %54, %58 : vector<16x128xi1>, vector<16x128xf32>
    %60 = vector.extract_strided_slice %59 {offsets = [0, 0], sizes = [16, 8], strides = [1, 1]} : vector<16x128xf32> to vector<16x8xf32>
    %c0_40 = arith.constant 0 : index
    %c0_41 = arith.constant 0 : index
    %61 = vector.load %arg5[%c0_40, %c0_41] : memref<16x8xf32, #tpu.memory_space<vmem>>, vector<16x8xf32>
    tpu.vector_store %arg5[%c0_40, %c0_41], %60 {strides = array<i32>} : memref<16x8xf32, #tpu.memory_space<vmem>>, vector<16x8xf32>,
    return
  }
  func.func @transform_0(%arg0: i32) -> (i32, i32) {
    %c0_i32 = arith.constant 0 : i32
    %c0_i32_0 = arith.constant 0 : i32
    return %arg0, %c0_i32 : i32, i32
  }
  func.func @transform_1(%arg0: i32) -> (i32, i32) {
    %c0_i32 = arith.constant 0 : i32
    %c0_i32_0 = arith.constant 0 : i32
    %c0_i32_1 = arith.constant 0 : i32
    return %c0_i32, %c0_i32_0 : i32, i32
  }
  func.func @transform_2(%arg0: i32) -> (i32, i32, i32) {
    %c0_i32 = arith.constant 0 : i32
    %c0_i32_0 = arith.constant 0 : i32
    %c0_i32_1 = arith.constant 0 : i32
    %c0_i32_2 = arith.constant 0 : i32
    return %c0_i32, %c0_i32_0, %c0_i32_1 : i32, i32, i32
  }
  func.func @transform_3(%arg0: i32) -> (i32, i32, i32) {
    %c0_i32 = arith.constant 0 : i32
    %c0_i32_0 = arith.constant 0 : i32
    %c0_i32_1 = arith.constant 0 : i32
    %c0_i32_2 = arith.constant 0 : i32
    return %c0_i32, %c0_i32_0, %c0_i32_1 : i32, i32, i32
  }
  func.func @transform_4(%arg0: i32) -> (i32, i32) {
    %c0_i32 = arith.constant 0 : i32
    %c0_i32_0 = arith.constant 0 : i32
    return %arg0, %c0_i32 : i32, i32
  }
}

</mosaic_0001>

<bundles_post_ra>
// kernel: tpu_custom_call.1
= control target key start
LH: loop header
LB: loop body
LE: loop exit
PB: predicated region body
PF: predicated region fallthrough
CT: control target
= control target key end

     0   :  { %9 = vsyncpa [#allocation3], 0  ;;  %s507_s0 = inlined_call_operand.hbm [shape: f32[16,32], index: 0, kind: input, shape index: {}]   ;;  %s508_s1 = inlined_call_operand.hbm [shape: f32[32,128], index: 1, kind: input, shape index: {}]   ;;  %s509_s2 = inlined_call_operand.hbm [shape: f32[4,128,128], index: 2, kind: input, shape index: {}]   ;;  %s510_s3 = inlined_call_operand.hbm [shape: f32[5,1,128], index: 3, kind: input, shape index: {}]   ;;  %s511_s4 = inlined_call_operand.vmem [shape: f32[16,8], index: 4, kind: output, shape index: {}]  }
   0x1   :  { %10 = vsyncpa [#allocation5], 0 }
   0x2   :  { %11 = vsyncpa [#allocation8], 0  ;;  %s29_s17 = sshll.u32 %s508_s1, 4  ;;  %s456_s18 = smov [#allocation4]   ;;  %s30_s17 = int_to_ptr.hbm [resolvable:$true] %s29_s17 }
   0x3   :  { %s31_s19 = sshll.u32 %s456_s18, 4  ;;  %s16_s22 = sshll.u32 %s507_s0, 4  ;;  %s32_s19 = int_to_ptr.vmem [resolvable:$true] %s31_s19  ;;  %s17_s22 = int_to_ptr.hbm [resolvable:$true] %s16_s22 }
   0x4   :  { %s457_s23 = smov 128   ;;  %s458_s24 = smov 8  }
   0x5   :  { %37 = dma.hbm_to_vmem [thread:$0]  %s30_s17, 512, %s32_s19, [#allocation5], %s457_s23, %s457_s23, %s458_s24  }
   0x6   :  { %s459_s25 = smov [#allocation2]   ;;  %s42_s29 = sshll.u32 %s509_s2, 4  ;;  %s43_s29 = int_to_ptr.hbm [resolvable:$true] %s42_s29 }
   0x7   :  { %s18_s26 = sshll.u32 %s459_s25, 4  ;;  %s55_s5 = sshll.u32 %s510_s3, 4  ;;  %s19_s26 = int_to_ptr.vmem [resolvable:$true] %s18_s26  ;;  %s56_s5 = int_to_ptr.hbm [resolvable:$true] %s55_s5 }
   0x8   :  { %24 = dma.hbm_to_vmem [thread:$0]  %s17_s22, 256, %s19_s26, [#allocation3], %s457_s23, %s457_s23, %s458_s24  }
   0x9   :  { %s460_s6 = smov [#allocation6]   ;;  %s461_s0 = smov [#allocation7]  }
   0xa   :  { %s44_s7 = sshll.u32 %s460_s6, 4  ;;  %s57_s8 = sshll.u32 %s461_s0, 4  ;;  %s45_s7 = int_to_ptr.vmem [resolvable:$true] %s44_s7  ;;  %s58_s8 = int_to_ptr.vmem [resolvable:$true] %s57_s8 }
   0xb   :  { %50 = dma.hbm_to_vmem [thread:$0]  %s43_s29, 8192, %s45_s7, [#allocation5], %s457_s23, %s457_s23, %s458_s24  }
   0xc   :  { %s462_s9 = smov 16   ;;  %s463_s10 = smov 1  }
   0xd   :  { %63 = dma.hbm_to_vmem [thread:$0]  %s56_s5, 80, %s58_s8, [#allocation8], %s462_s9, %s462_s9, %s463_s10  }
   0xe   :  { %450 = dma.done.wait [#allocation3], 256  }
   0xf   :  { %451 = vsyncadd [#allocation3], 4294967040 }
  0x10   :  { %452 = dma.done.wait [#allocation5], 8704  }
  0x11   :  { %453 = vsyncadd [#allocation5], 4294958592 }
  0x12   :  { %454 = dma.done.wait [#allocation8], 80  }
  0x13   :  { %455 = vsyncadd [#allocation8], 4294967216  ;;  %v85_v0 = vld [vmem:[#allocation4 + $0x18] sm:$0xff]  ;;  %v84_v1 = vld [vmem:[#allocation4 + $0x10] sm:$0xff]  ;;  %vm90_vm0 = vcmask 261120   ;;  %vm329_vm10 = vcmask 64512  }
  0x14   :  { %109 = vmatpush.msra.mxu0 %v85_v0  ;;  %v83_v2 = vld [vmem:[#allocation4 + $0x8] sm:$0xff]  ;;  %v141_v3 = vld [vmem:[#allocation6 + $0x78] sm:$0xff]  ;;  %v140_v4 = vld [vmem:[#allocation6 + $0x70] sm:$0xff] }
  0x15   :  { %147 = vmatpush.msra.mxu1 %v141_v3  ;;  %v82_v5 = vld [vmem:[#allocation4] sm:$0xff]  ;;  %v139_v6 = vld [vmem:[#allocation6 + $0x68] sm:$0xff]  ;;  %v80_v7 = vld [vmem:[#allocation2] sm:$0xff] }
  0x16   :  { %110 = vmatpush.msra.mxu0 %v84_v1  ;;  %v138_v8 = vld [vmem:[#allocation6 + $0x60] sm:$0xff]  ;;  %v137_v9 = vld [vmem:[#allocation6 + $0x58] sm:$0xff]  ;;  %v136_v10 = vld [vmem:[#allocation6 + $0x50] sm:$0xff] }
  0x17   :  { %148 = vmatpush.msra.mxu1 %v140_v4  ;;  %v135_v11 = vld [vmem:[#allocation6 + $0x48] sm:$0xff]  ;;  %v81_v12 = vld [vmem:[#allocation2 + $0x8] sm:$0xff]  ;;  %v134_v13 = vld [vmem:[#allocation6 + $0x40] sm:$0xff] }
  0x18   :  { %111 = vmatpush.msra.mxu0 %v83_v2  ;;  %v133_v14 = vld [vmem:[#allocation6 + $0x38] sm:$0xff]  ;;  %v132_v15 = vld [vmem:[#allocation6 + $0x30] sm:$0xff]  ;;  %v131_v16 = vld [vmem:[#allocation6 + $0x28] sm:$0xff] }
  0x19   :  { %149 = vmatpush.msra.mxu1 %v139_v6  ;;  %v130_v17 = vld [vmem:[#allocation6 + $0x20] sm:$0xff]  ;;  %v129_v18 = vld [vmem:[#allocation6 + $0x18] sm:$0xff]  ;;  %v128_v19 = vld [vmem:[#allocation6 + $0x10] sm:$0xff] }
  0x1a   :  { %112 = vmatpush.msra.mxu0 %v82_v5  ;;  %v127_v20 = vld [vmem:[#allocation6 + $0x8] sm:$0xff]  ;;  %v126_v21 = vld [vmem:[#allocation6] sm:$0xff]  ;;  %v192_v22 = vld [vmem:[#allocation6 + $0xf8] sm:$0xff] }
  0x1b   :  { %339 = vmatmul.msk.f32.vlgmr.msra.gmra.mxu0 %vm90_vm0, %v80_v7  ;;  %150 = vmatpush.msra.mxu1 %v138_v8  ;;  %v191_v23 = vld [vmem:[#allocation6 + $0xf0] sm:$0xff]  ;;  %v190_v24 = vld [vmem:[#allocation6 + $0xe8] sm:$0xff]  ;;  %v189_v25 = vld [vmem:[#allocation6 + $0xe0] sm:$0xff] }
  0x1c   :  { %198 = vmatpush.msra.mxu2 %v192_v22  ;;  %v188_v26 = vld [vmem:[#allocation6 + $0xd8] sm:$0xff]  ;;  %v187_v27 = vld [vmem:[#allocation6 + $0xd0] sm:$0xff]  ;;  %v186_v28 = vld [vmem:[#allocation6 + $0xc8] sm:$0xff] }
  0x1d   :  { %151 = vmatpush.msra.mxu1 %v137_v9  ;;  %v185_v29 = vld [vmem:[#allocation6 + $0xc0] sm:$0xff]  ;;  %v184_v30 = vld [vmem:[#allocation6 + $0xb8] sm:$0xff]  ;;  %v183_v32 = vld [vmem:[#allocation6 + $0xb0] sm:$0xff] }
  0x1e   :  { %199 = vmatpush.msra.mxu2 %v191_v23  ;;  %v349_v31 = vld [vmem:[#allocation7] ss:$0 sm:$0xff]  ;;  %v182_v34 = vld [vmem:[#allocation6 + $0xa8] sm:$0xff]  ;;  %v180_v38 = vld [vmem:[#allocation6 + $0x98] sm:$0xff] }
  0x1f   :  { %152 = vmatpush.msra.mxu1 %v136_v10  ;;  %v181_v36 = vld [vmem:[#allocation6 + $0xa0] sm:$0xff]  ;;  %v179_v44 = vld [vmem:[#allocation6 + $0x90] sm:$0xff]  ;;  %v178_v45 = vld [vmem:[#allocation6 + $0x88] sm:$0xff] }
  0x20   :  { %200 = vmatpush.msra.mxu2 %v190_v24  ;;  %v177_v46 = vld [vmem:[#allocation6 + $0x80] sm:$0xff]  ;;  %v243_v47 = vld [vmem:[#allocation6 + $0x178] sm:$0xff]  ;;  %v242_v48 = vld [vmem:[#allocation6 + $0x170] sm:$0xff] }
  0x21   :  { %153 = vmatpush.msra.mxu1 %v135_v11  ;;  %249 = vmatpush.msra.mxu3 %v243_v47  ;;  %v241_v49 = vld [vmem:[#allocation6 + $0x168] sm:$0xff]  ;;  %v240_v50 = vld [vmem:[#allocation6 + $0x160] sm:$0xff]  ;;  %v239_v51 = vld [vmem:[#allocation6 + $0x158] sm:$0xff] }
  0x22   :  { %201 = vmatpush.msra.mxu2 %v189_v25  ;;  %v238_v52 = vld [vmem:[#allocation6 + $0x150] sm:$0xff]  ;;  %v237_v53 = vld [vmem:[#allocation6 + $0x148] sm:$0xff]  ;;  %v236_v54 = vld [vmem:[#allocation6 + $0x140] sm:$0xff] }
  0x23   :  { %340 = vmatmul.msk.f32.gmra.mxu0 %vm90_vm0, %v81_v12  ;;  %154 = vmatpush.msra.mxu1 %v134_v13  ;;  %v235_v55 = vld [vmem:[#allocation6 + $0x138] sm:$0xff]  ;;  %v350_v56 = vld [vmem:[#allocation7 + $0x1] ss:$0 sm:$0xff]  ;;  %v234_v57 = vld [vmem:[#allocation6 + $0x130] sm:$0xff] }
  0x24   :  { %202 = vmatpush.msra.mxu2 %v188_v26  ;;  %250 = vmatpush.msra.mxu3 %v242_v48  ;;  %v233_v59 = vld [vmem:[#allocation6 + $0x128] sm:$0xff]  ;;  %v232_v61 = vld [vmem:[#allocation6 + $0x120] sm:$0xff]  ;;  %v231_v63 = vld [vmem:[#allocation6 + $0x118] sm:$0xff] }
  0x25   :  { %155 = vmatpush.msra.mxu1 %v133_v14  ;;  %v230_v5 = vld [vmem:[#allocation6 + $0x110] sm:$0xff]  ;;  %v229_v6 = vld [vmem:[#allocation6 + $0x108] sm:$0xff]  ;;  %v228_v7 = vld [vmem:[#allocation6 + $0x100] sm:$0xff] }
  0x26   :  { %203 = vmatpush.msra.mxu2 %v187_v27  ;;  %251 = vmatpush.msra.mxu3 %v241_v49  ;;  %v294_v8 = vld [vmem:[#allocation6 + $0x1f8] sm:$0xff]  ;;  %v293_v9 = vld [vmem:[#allocation6 + $0x1f0] sm:$0xff]  ;;  %v292_v10 = vld [vmem:[#allocation6 + $0x1e8] sm:$0xff] }
  0x27   :  { %156 = vmatpush.msra.mxu1 %v132_v15  ;;  %300 = vmatpush.msrb.mxu0 %v294_v8  ;;  %v291_v11 = vld [vmem:[#allocation6 + $0x1e0] sm:$0xff]  ;;  %v290_v12 = vld [vmem:[#allocation6 + $0x1d8] sm:$0xff]  ;;  %v289_v13 = vld [vmem:[#allocation6 + $0x1d0] sm:$0xff] }
  0x28   :  { %204 = vmatpush.msra.mxu2 %v186_v28  ;;  %252 = vmatpush.msra.mxu3 %v240_v50  ;;  %v288_v14 = vld [vmem:[#allocation6 + $0x1c8] sm:$0xff]  ;;  %v287_v15 = vld [vmem:[#allocation6 + $0x1c0] sm:$0xff]  ;;  %v282_v24 = vld [vmem:[#allocation6 + $0x198] sm:$0xff] }
  0x29   :  { %157 = vmatpush.msra.mxu1 %v131_v16  ;;  %301 = vmatpush.msrb.mxu0 %v293_v9  ;;  %v286_v16 = vld [vmem:[#allocation6 + $0x1b8] sm:$0xff]  ;;  %v283_v22 = vld [vmem:[#allocation6 + $0x1a0] sm:$0xff] }
  0x2a   :  { %205 = vmatpush.msra.mxu2 %v185_v29  ;;  %253 = vmatpush.msra.mxu3 %v239_v51 }
  0x2b   :  { %158 = vmatpush.msra.mxu1 %v130_v17  ;;  %302 = vmatpush.msrb.mxu0 %v292_v10  ;;  %v351_v17 = vld [vmem:[#allocation7 + $0x2] ss:$0 sm:$0xff] }
  0x2c   :  { %206 = vmatpush.msra.mxu2 %v184_v30  ;;  %254 = vmatpush.msra.mxu3 %v238_v52  ;;  %v281_v30 = vld [vmem:[#allocation6 + $0x190] sm:$0xff] }
  0x2d   :  { %159 = vmatpush.msra.mxu1 %v129_v18  ;;  %303 = vmatpush.msrb.mxu0 %v291_v11  ;;  %v285_v18 = vld [vmem:[#allocation6 + $0x1b0] sm:$0xff] }
  0x2e   :  { %207 = vmatpush.msra.mxu2 %v183_v32  ;;  %255 = vmatpush.msra.mxu3 %v237_v53  ;;  %v279_v32 = vld [vmem:[#allocation6 + $0x180] sm:$0xff] }
  0x2f   :  { %160 = vmatpush.msra.mxu1 %v128_v19  ;;  %304 = vmatpush.msrb.mxu0 %v290_v12 }
  0x30   :  { %208 = vmatpush.msra.mxu2 %v182_v34  ;;  %256 = vmatpush.msra.mxu3 %v236_v54 }
  0x31   :  { %161 = vmatpush.msra.mxu1 %v127_v20  ;;  %305 = vmatpush.msrb.mxu0 %v289_v13  ;;  %v284_v20 = vld [vmem:[#allocation6 + $0x1a8] sm:$0xff] }
  0x32   :  { %209 = vmatpush.msra.mxu2 %v181_v36  ;;  %257 = vmatpush.msra.mxu3 %v235_v55 }
  0x33   :  { %162 = vmatpush.msra.mxu1 %v126_v21  ;;  %306 = vmatpush.msrb.mxu0 %v288_v14 }
  0x34   :  { %210 = vmatpush.msra.mxu2 %v180_v38  ;;  %258 = vmatpush.msra.mxu3 %v234_v57 }
  0x35   :  { %307 = vmatpush.msrb.mxu0 %v287_v15 }
  0x36   :  { %211 = vmatpush.msra.mxu2 %v179_v44  ;;  %259 = vmatpush.msra.mxu3 %v233_v59 }
  0x37   :  { %308 = vmatpush.msrb.mxu0 %v286_v16 }
  0x38   :  { %212 = vmatpush.msra.mxu2 %v178_v45  ;;  %260 = vmatpush.msra.mxu3 %v232_v61 }
  0x39   :  { %309 = vmatpush.msrb.mxu0 %v285_v18 }
  0x3a   :  { %213 = vmatpush.msra.mxu2 %v177_v46  ;;  %261 = vmatpush.msra.mxu3 %v231_v63 }
  0x3b   :  { %310 = vmatpush.msrb.mxu0 %v284_v20 }
  0x3c   :  { %262 = vmatpush.msra.mxu3 %v230_v5 }
  0x3d   :  { %311 = vmatpush.msrb.mxu0 %v283_v22 }
  0x3e   :  { %263 = vmatpush.msra.mxu3 %v229_v6 }
  0x3f   :  { %312 = vmatpush.msrb.mxu0 %v282_v24 }
  0x40   :  { %264 = vmatpush.msra.mxu3 %v228_v7 }
  0x41   :  { %313 = vmatpush.msrb.mxu0 %v281_v30 }
  0x98   :  { %v114_v33 = vpop.f32.mrf.mxu0 }
  0x99   :  { %v115_v35 = vadd.f32 %v349_v31, %v114_v33  ;;  %v352_v33 = vld [vmem:[#allocation7 + $0x3] ss:$0 sm:$0xff] }
  0x9b   :  { %vm120_vm1 = vcmp.ge.f32.partialorder %v115_v35, 0.0  ;;  %v122_v37 = vmul.f32 0.4, %v115_v35 }
  0x9d   :  { %v124_v39 = vsel %vm120_vm1, %v115_v35, %v122_v37 }
  0x9e   :  { %163 = vmatmul.f32.vlgmr.msra.gmra.mxu1 %v124_v39 }
  0xa0   :  { %v117_v40 = vpop.f32.mrf.mxu0 }
  0xa1   :  { %v118_v41 = vadd.f32 %v349_v31, %v117_v40  ;;  %v280_v31 = vld [vmem:[#allocation6 + $0x188] sm:$0xff] }
  0xa2   :  { %314 = vmatpush.msrb.mxu0 %v280_v31 }
  0xa3   :  { %vm121_vm2 = vcmp.ge.f32.partialorder %v118_v41, 0.0  ;;  %v123_v42 = vmul.f32 0.4, %v118_v41 }
  0xa4   :  { %315 = vmatpush.msrb.mxu0 %v279_v32 }
  0xa5   :  { %v125_v43 = vsel %vm121_vm2, %v118_v41, %v123_v42  ;;  %v353_v42 = vld [vmem:[#allocation7 + $0x4] ss:$0 sm:$0xff] }
  0xa6   :  { %166 = vmatmul.f32.gmra.mxu1 %v125_v43 }
 0x11b   :  { %v164_v58 = vpop.f32.mrf.mxu1 }
 0x11c   :  { %v165_v60 = vadd.f32 %v350_v56, %v164_v58 }
 0x11e   :  { %vm170_vm3 = vcmp.ge.f32.partialorder %v165_v60, 0.0  ;;  %v172_v62 = vmul.f32 0.4, %v165_v60 }
 0x120   :  { %v174_v0 = vsel %vm170_vm3, %v165_v60, %v172_v62 }
 0x121   :  { %214 = vmatmul.f32.vlgmr.msra.gmra.mxu2 %v174_v0 }
 0x123   :  { %v167_v1 = vpop.f32.mrf.mxu1 }
 0x124   :  { %v168_v2 = vadd.f32 %v350_v56, %v167_v1 }
 0x126   :  { %vm171_vm4 = vcmp.ge.f32.partialorder %v168_v2, 0.0  ;;  %v173_v3 = vmul.f32 0.4, %v168_v2 }
 0x128   :  { %v175_v4 = vsel %vm171_vm4, %v168_v2, %v173_v3 }
 0x129   :  { %217 = vmatmul.f32.gmra.mxu2 %v175_v4 }
 0x1a4   :  { %v215_v19 = vpop.f32.mrf.mxu2 }
 0x1a5   :  { %v216_v21 = vadd.f32 %v351_v17, %v215_v19 }
 0x1a7   :  { %vm221_vm5 = vcmp.ge.f32.partialorder %v216_v21, 0.0  ;;  %v223_v23 = vmul.f32 0.4, %v216_v21 }
 0x1a9   :  { %v225_v25 = vsel %vm221_vm5, %v216_v21, %v223_v23 }
 0x1aa   :  { %265 = vmatmul.f32.vlgmr.msra.gmra.mxu3 %v225_v25 }
 0x1ac   :  { %v218_v26 = vpop.f32.mrf.mxu2 }
 0x1ad   :  { %v219_v27 = vadd.f32 %v351_v17, %v218_v26 }
 0x1af   :  { %vm222_vm6 = vcmp.ge.f32.partialorder %v219_v27, 0.0  ;;  %v224_v28 = vmul.f32 0.4, %v219_v27 }
 0x1b1   :  { %v226_v29 = vsel %vm222_vm6, %v219_v27, %v224_v28 }
 0x1b2   :  { %268 = vmatmul.f32.gmra.mxu3 %v226_v29 }
 0x22d   :  { %v266_v34 = vpop.f32.mrf.mxu3 }
 0x22e   :  { %v267_v35 = vadd.f32 %v352_v33, %v266_v34 }
 0x230   :  { %v274_v36 = vmul.f32 0.4, %v267_v35  ;;  %vm272_vm7 = vcmp.ge.f32.partialorder %v267_v35, 0.0 }
 0x232   :  { %v276_v37 = vsel %vm272_vm7, %v267_v35, %v274_v36 }
 0x233   :  { %316 = vmatmul.f32.vlgmr.msrb.gmra.mxu0 %v276_v37 }
 0x235   :  { %v269_v38 = vpop.f32.mrf.mxu3 }
 0x236   :  { %v270_v39 = vadd.f32 %v352_v33, %v269_v38 }
 0x238   :  { %vm273_vm8 = vcmp.ge.f32.partialorder %v270_v39, 0.0  ;;  %v275_v40 = vmul.f32 0.4, %v270_v39 }
 0x23a   :  { %v277_v41 = vsel %vm273_vm8, %v270_v39, %v275_v40 }
 0x23b   :  { %319 = vmatmul.f32.gmra.mxu0 %v277_v41 }
 0x2b0   :  { %v317_v43 = vpop.f32.mrf.mxu0 }
 0x2b1   :  { %v318_v44 = vadd.f32 %v353_v42, %v317_v43 }
 0x2b3   :  { %vm323_vm9 = vcmp.ge.f32.partialorder %v318_v44, 0.0  ;;  %v325_v45 = vmul.f32 0.4, %v318_v44 }
 0x2b5   :  { %v327_v46 = vsel %vm323_vm9, %v318_v44, %v325_v45 }
 0x2b6   :  { %330 = vst.msk [vmem:[%s511_s4] sm:$0xff] %vm329_vm10, %v327_v46 }
 0x2b8   :  { %v320_v47 = vpop.f32.mrf.mxu0 }
 0x2b9   :  { %v321_v48 = vadd.f32 %v353_v42, %v320_v47 }
 0x2bb   :  { %vm324_vm11 = vcmp.ge.f32.partialorder %v321_v48, 0.0  ;;  %v326_v49 = vmul.f32 0.4, %v321_v48 }
 0x2bd   :  { %v328_v50 = vsel %vm324_vm11, %v321_v48, %v326_v49 }
 0x2be   :  { %331 = vst.msk [vmem:[%s511_s4 + $0x8] sm:$0xff] %vm329_vm10, %v328_v50 }
 0x2bf   :  { %336 = vsyncpa [#allocation3], 1 }
 0x2c0   :  { %337 = vsyncpa [#allocation5], 1 }
 0x2c1   :  { %338 = vsyncpa [#allocation8], 1 }

</bundles_post_ra>
